<compile_context>
chip_gen: v6e
topology: v6e:2x2x1
jax: 0.10.0
libtpu: 0.0.40
codegen_flags: <defaults>
</compile_context>

<pallas_src>
from functools import partial

import jax
import jax.numpy as jnp
from jax.experimental import pallas as pl
from jax.experimental.pallas import tpu as pltpu


def _sylvester_kernel(zper_ref, r1_ref, r2_ref, b_ref, dprod_ref,
                      z_ref, ldj_ref, *, add_zk):
    zper = zper_ref[...].astype(jnp.float32)        # (BB, Z)
    b = b_ref[...].astype(jnp.float32)              # (BB, Z)

    # r2qzb[n, j] = sum_z zper[n, z] * r2[n, j, z] + b[n, j]
    # VPU broadcast-multiply + one lane (XLU) reduce; avoids a degenerate
    # M=1 MXU matmul.
    r2 = r2_ref[...].astype(jnp.float32)            # (BB, Z, Z)
    r2qzb = jnp.sum(r2 * zper[:, None, :], axis=-1) + b
    hval = jnp.tanh(r2qzb)                          # (BB, Z)

    # delta[n, j] = sum_z h(r2qzb)[n, z] * r1[n, j, z]
    r1 = r1_ref[...].astype(jnp.float32)            # (BB, Z, Z)
    delta = jnp.sum(r1 * hval[:, None, :], axis=-1)  # (BB, Z)
    if add_zk:
        z_ref[...] = (zper + delta).astype(z_ref.dtype)
    else:
        z_ref[...] = delta.astype(z_ref.dtype)

    # diag(r1)*diag(r2) arrives precomputed from the wrapper: no eye-mask,
    # no third full-lane reduction, no extra (BB, Z, Z) multiplies.
    der_h = 1.0 - hval * hval                       # tanh'(r2qzb)
    diag_j = der_h * dprod_ref[...].astype(jnp.float32) + 1.0
    ldj_ref[...] = jnp.log(jnp.abs(diag_j) + 1e-8).astype(ldj_ref.dtype)


def _round_up(x, m):
    return -(-x // m) * m


def _pick_batch_block(B, Z, itemsize=4, r_bytes_per_step=4 << 20):
    """Batch tile sized so one grid step streams ~4 MiB of lane-padded r1+r2.

    Budgeting uses the (8,128)-tiled layout sizes (round_up(Z,8) x
    round_up(Z,128)), not the logical Z*Z.  For large batches the tile is also
    capped so the parallel grid has >= 4 steps (balanced work for v7x's two
    TensorCores, and real DMA/compute overlap)."""
    per_row = 2 * _round_up(Z, 8) * _round_up(Z, 128) * itemsize  # r1 + r2
    bb = max(8, r_bytes_per_step // per_row)
    if B >= 32:
        bb = min(bb, _round_up(pl.cdiv(B, 4), 8))   # >= 4 grid steps
    bb = max(8, (bb // 8) * 8)
    return int(B if bb >= B else bb)


def triangular_sylvester(zk, r1, r2, b, permute_z=None, sum_ldj=True,
                         batch_block=None):
    """Pallas implementation of TriangularSylvester.forward."""
    B, Z = zk.shape
    b2 = b.reshape(B, Z)

    # Tiny (B, Z) precompute: diag(r1) * diag(r2).  ~B*Z*4 extra HBM bytes in
    # exchange for dropping 1/3 of the per-step cross-lane reduce work.
    diag_prod = (jnp.diagonal(r1, axis1=-2, axis2=-1)
                 * jnp.diagonal(r2, axis1=-2, axis2=-1)).astype(jnp.float32)

    if permute_z is not None:
        # gather glue stays in XLA; the kernel then returns only the delta.
        z_per = zk[:, permute_z]
        add_zk = False
    else:
        z_per = zk
        add_zk = True

    BB = batch_block if batch_block is not None else _pick_batch_block(B, Z)
    if BB >= B:
        BB = B                                    # full-extent block is legal
    else:
        BB = max(8, (BB // 8) * 8)                # (8,128) constraint on 2-D blocks
    grid = (pl.cdiv(B, BB),)

    # Actual padded working set (double-buffered) + headroom.
    zl = _round_up(Z, 128)
    zs = _round_up(Z, 8)
    bbs = _round_up(BB, 8)
    bytes_2d = bbs * zl * 4                       # zper, b, dprod, z, ldj
    bytes_3d = BB * zs * zl * 4                   # r1, r2
    per_step = 5 * bytes_2d + 2 * bytes_3d
    vmem_limit = int(min(64 << 20, max(16 << 20, 2 * per_step + (8 << 20))))

    cost = pl.CostEstimate(
        flops=int(4 * B * Z * Z),                 # two multiply-reduce passes
        transcendentals=int(2 * B * Z),           # tanh + log
        bytes_accessed=int(2 * B * zs * zl * 4 + 7 * B * zl * 4),
    )

    z_out, ldj_full = pl.pallas_call(
        partial(_sylvester_kernel, add_zk=add_zk),
        out_shape=(
            jax.ShapeDtypeStruct((B, Z), zk.dtype),
            jax.ShapeDtypeStruct((B, Z), jnp.float32),
        ),
        grid=grid,
        in_specs=[
            pl.BlockSpec((BB, Z), lambda i: (i, 0)),        # z_per
            pl.BlockSpec((BB, Z, Z), lambda i: (i, 0, 0)),  # r1
            pl.BlockSpec((BB, Z, Z), lambda i: (i, 0, 0)),  # r2
            pl.BlockSpec((BB, Z), lambda i: (i, 0)),        # b
            pl.BlockSpec((BB, Z), lambda i: (i, 0)),        # diag(r1)*diag(r2)
        ],
        out_specs=(
            pl.BlockSpec((BB, Z), lambda i: (i, 0)),        # z (or delta)
            pl.BlockSpec((BB, Z), lambda i: (i, 0)),        # log|diag J|
        ),
        compiler_params=pltpu.CompilerParams(
            dimension_semantics=("parallel",),
            vmem_limit_bytes=vmem_limit),
        cost_estimate=cost,
    )(z_per, r1, r2, b2, diag_prod)

    if permute_z is not None:
        z = z_out[:, permute_z] + zk              # z = P(delta) + zk
    else:
        z = z_out

    # sum over the z-dim in the wrapper (keeps the kernel's stores lane-dense)
    log_det_j = jnp.sum(ldj_full, axis=-1) if sum_ldj else ldj_full
    return z, log_det_j


def _reference_forward(zk, r1, r2, b, permute_z=None, sum_ldj=True):
    """Pure-JAX transcription of the PyTorch module (for verification)."""
    zk1 = zk[:, None, :]
    diag_r1 = jnp.diagonal(r1, 0, -1, -2)
    diag_r2 = jnp.diagonal(r2, 0, -1, -2)
    z_per = zk1 if permute_z is None else zk1[:, :, permute_z]
    r2qzb = jnp.matmul(z_per, jnp.swapaxes(r2, 2, 1)) + b
    z = jnp.matmul(jnp.tanh(r2qzb), jnp.swapaxes(r1, 2, 1))
    if permute_z is not None:
        z = z[:, :, permute_z]
    z = z + zk1
    z = z[:, 0, :]
    diag_j = diag_r1 * diag_r2
    diag_j = (1.0 - jnp.tanh(r2qzb)[:, 0, :] ** 2) * diag_j
    diag_j = diag_j + 1.0
    log_diag_j = jnp.log(jnp.abs(diag_j) + 1e-8)
    log_det_j = log_diag_j.sum(-1) if sum_ldj else log_diag_j
    return z, log_det_j


if __name__ == "__main__":
    key = jax.random.PRNGKey(0)
    k1, k2, k3, k4 = jax.random.split(key, 4)

    B, Z = 4, 32  # batch_size, z_size
    zk = jax.random.normal(k1, (B, Z), jnp.float32)
    r1 = jnp.triu(0.1 * jax.random.normal(k2, (B, Z, Z), jnp.float32))
    r2 = jnp.triu(0.1 * jax.random.normal(k3, (B, Z, Z), jnp.float32))
    b = 0.1 * jax.random.normal(k4, (B, 1, Z), jnp.float32)

    # ---- permute_z=None, sum_ldj=True ----
    z, ldj = triangular_sylvester(zk, r1, r2, b, permute_z=None, sum_ldj=True)
    jax.block_until_ready((z, ldj))
    z_ref, ldj_ref = _reference_forward(zk, r1, r2, b, None, True)
    assert jnp.allclose(z, z_ref, atol=1e-5, rtol=1e-5)
    assert jnp.allclose(ldj, ldj_ref, atol=1e-5, rtol=1e-5)

    # ---- permute_z given, sum_ldj=False ----
    perm = jnp.arange(Z)[::-1]
    z2, ldj2 = triangular_sylvester(zk, r1, r2, b, permute_z=perm,
                                    sum_ldj=False)
    jax.block_until_ready((z2, ldj2))
    z2_ref, ldj2_ref = _reference_forward(zk, r1, r2, b, perm, False)
    assert jnp.allclose(z2, z2_ref, atol=1e-5, rtol=1e-5)
    assert jnp.allclose(ldj2, ldj2_ref, atol=1e-5, rtol=1e-5)

    # ---- ragged batch (B not divisible by BB), no padding copies ----
    B3 = 20
    k5, k6, k7, k8 = jax.random.split(jax.random.PRNGKey(1), 4)
    zk3 = jax.random.normal(k5, (B3, Z), jnp.float32)
    r13 = jnp.triu(0.1 * jax.random.normal(k6, (B3, Z, Z), jnp.float32))
    r23 = jnp.triu(0.1 * jax.random.normal(k7, (B3, Z, Z), jnp.float32))
    b3 = 0.1 * jax.random.normal(k8, (B3, 1, Z), jnp.float32)
    z3, ldj3 = triangular_sylvester(zk3, r13, r23, b3, permute_z=None,
                                    sum_ldj=True, batch_block=8)
    jax.block_until_ready((z3, ldj3))
    z3_ref, ldj3_ref = _reference_forward(zk3, r13, r23, b3, None, True)
    assert jnp.allclose(z3, z3_ref, atol=1e-5, rtol=1e-5)
    assert jnp.allclose(ldj3, ldj3_ref, atol=1e-5, rtol=1e-5)

    # ---- larger batch: exercises auto-picked tile + multi-step parallel grid ----
    B4 = 64
    k9, k10, k11, k12 = jax.random.split(jax.random.PRNGKey(2), 4)
    zk4 = jax.random.normal(k9, (B4, Z), jnp.float32)
    r14 = jnp.triu(0.1 * jax.random.normal(k10, (B4, Z, Z), jnp.float32))
    r24 = jnp.triu(0.1 * jax.random.normal(k11, (B4, Z, Z), jnp.float32))
    b4 = 0.1 * jax.random.normal(k12, (B4, 1, Z), jnp.float32)
    z4, ldj4 = triangular_sylvester(zk4, r14, r24, b4, permute_z=None,
                                    sum_ldj=True)
    jax.block_until_ready((z4, ldj4))
    z4_ref, ldj4_ref = _reference_forward(zk4, r14, r24, b4, None, True)
    assert jnp.allclose(z4, z4_ref, atol=1e-5, rtol=1e-5)
    assert jnp.allclose(ldj4, ldj4_ref, atol=1e-5, rtol=1e-5)

    print("KERNEL_OK")
</pallas_src>

<mosaic_0001>
module attributes {stable_mosaic.version = 11 : i64} {
  func.func @_sylvester_kernel(%arg0: i32, %arg1: memref<4x32xf32, #tpu.memory_space<vmem>>, %arg2: memref<4x32x32xf32, #tpu.memory_space<vmem>>, %arg3: memref<4x32x32xf32, #tpu.memory_space<vmem>>, %arg4: memref<4x32xf32, #tpu.memory_space<vmem>>, %arg5: memref<4x32xf32, #tpu.memory_space<vmem>>, %arg6: memref<4x32xf32, #tpu.memory_space<vmem>>, %arg7: memref<4x32xf32, #tpu.memory_space<vmem>>) attributes {dimension_semantics = [#tpu.dimension_semantics<parallel>], iteration_bounds = array<i64: 1>, scalar_prefetch = 0 : i64, scratch_operands = 0 : i64, tpu.core_type = #tpu.core_type<tc>, window_params = [{transform_indices = @transform_0, window_bounds = array<i64: 4, 32>}, {transform_indices = @transform_1, window_bounds = array<i64: 4, 32, 32>}, {transform_indices = @transform_2, window_bounds = array<i64: 4, 32, 32>}, {transform_indices = @transform_3, window_bounds = array<i64: 4, 32>}, {transform_indices = @transform_4, window_bounds = array<i64: 4, 32>}, {transform_indices = @transform_5, window_bounds = array<i64: 4, 32>}, {transform_indices = @transform_6, window_bounds = array<i64: 4, 32>}]} {
    %c0 = arith.constant 0 : index
    %c0_0 = arith.constant 0 : index
    %0 = vector.load %arg1[%c0, %c0_0] : memref<4x32xf32, #tpu.memory_space<vmem>>, vector<4x32xf32>
    %c0_1 = arith.constant 0 : index
    %c0_2 = arith.constant 0 : index
    %1 = vector.load %arg4[%c0_1, %c0_2] : memref<4x32xf32, #tpu.memory_space<vmem>>, vector<4x32xf32>
    %c0_3 = arith.constant 0 : index
    %c0_4 = arith.constant 0 : index
    %c0_5 = arith.constant 0 : index
    %2 = vector.load %arg3[%c0_3, %c0_4, %c0_5] : memref<4x32x32xf32, #tpu.memory_space<vmem>>, vector<4x32x32xf32>
    %3 = vector.shape_cast %0 : vector<4x32xf32> to vector<4x1x32xf32>
    %4 = vector.broadcast %3 : vector<4x1x32xf32> to vector<4x32x32xf32>
    %5 = arith.mulf %2, %4 : vector<4x32x32xf32>
    %cst = arith.constant dense<0.000000e+00> : vector<4x32xf32>
    %6 = vector.multi_reduction <add>, %5, %cst [2] : vector<4x32x32xf32> to vector<4x32xf32>
    %7 = arith.addf %6, %1 : vector<4x32xf32>
    %8 = math.tanh %7 : vector<4x32xf32>
    %c0_6 = arith.constant 0 : index
    %c0_7 = arith.constant 0 : index
    %c0_8 = arith.constant 0 : index
    %9 = vector.load %arg2[%c0_6, %c0_7, %c0_8] : memref<4x32x32xf32, #tpu.memory_space<vmem>>, vector<4x32x32xf32>
    %10 = vector.shape_cast %8 : vector<4x32xf32> to vector<4x1x32xf32>
    %11 = vector.broadcast %10 : vector<4x1x32xf32> to vector<4x32x32xf32>
    %12 = arith.mulf %9, %11 : vector<4x32x32xf32>
    %cst_9 = arith.constant dense<0.000000e+00> : vector<4x32xf32>
    %13 = vector.multi_reduction <add>, %12, %cst_9 [2] : vector<4x32x32xf32> to vector<4x32xf32>
    %14 = arith.addf %0, %13 : vector<4x32xf32>
    %c0_10 = arith.constant 0 : index
    %c0_11 = arith.constant 0 : index
    %15 = vector.load %arg6[%c0_10, %c0_11] : memref<4x32xf32, #tpu.memory_space<vmem>>, vector<4x32xf32>
    tpu.vector_store %arg6[%c0_10, %c0_11], %14 {strides = array<i32>} : memref<4x32xf32, #tpu.memory_space<vmem>>, vector<4x32xf32>,
    %16 = arith.mulf %8, %8 : vector<4x32xf32>
    %cst_12 = arith.constant 1.000000e+00 : f32
    %17 = vector.broadcast %cst_12 : f32 to vector<4x32xf32>
    %18 = arith.subf %17, %16 : vector<4x32xf32>
    %c0_13 = arith.constant 0 : index
    %c0_14 = arith.constant 0 : index
    %19 = vector.load %arg5[%c0_13, %c0_14] : memref<4x32xf32, #tpu.memory_space<vmem>>, vector<4x32xf32>
    %20 = arith.mulf %18, %19 : vector<4x32xf32>
    %cst_15 = arith.constant 1.000000e+00 : f32
    %21 = vector.broadcast %cst_15 : f32 to vector<4x32xf32>
    %22 = arith.addf %20, %21 : vector<4x32xf32>
    %23 = math.absf %22 : vector<4x32xf32>
    %cst_16 = arith.constant 9.99999993E-9 : f32
    %24 = vector.broadcast %cst_16 : f32 to vector<4x32xf32>
    %25 = arith.addf %23, %24 : vector<4x32xf32>
    %26 = math.log %25 : vector<4x32xf32>
    %c0_17 = arith.constant 0 : index
    %c0_18 = arith.constant 0 : index
    %27 = vector.load %arg7[%c0_17, %c0_18] : memref<4x32xf32, #tpu.memory_space<vmem>>, vector<4x32xf32>
    tpu.vector_store %arg7[%c0_17, %c0_18], %26 {strides = array<i32>} : memref<4x32xf32, #tpu.memory_space<vmem>>, vector<4x32xf32>,
    return
  }
  func.func @transform_0(%arg0: i32) -> (i32, i32) {
    %c0_i32 = arith.constant 0 : i32
    %c0_i32_0 = arith.constant 0 : i32
    return %arg0, %c0_i32 : i32, i32
  }
  func.func @transform_1(%arg0: i32) -> (i32, i32, i32) {
    %c0_i32 = arith.constant 0 : i32
    %c0_i32_0 = arith.constant 0 : i32
    %c0_i32_1 = arith.constant 0 : i32
    return %arg0, %c0_i32, %c0_i32_0 : i32, i32, i32
  }
  func.func @transform_2(%arg0: i32) -> (i32, i32, i32) {
    %c0_i32 = arith.constant 0 : i32
    %c0_i32_0 = arith.constant 0 : i32
    %c0_i32_1 = arith.constant 0 : i32
    return %arg0, %c0_i32, %c0_i32_0 : i32, i32, i32
  }
  func.func @transform_3(%arg0: i32) -> (i32, i32) {
    %c0_i32 = arith.constant 0 : i32
    %c0_i32_0 = arith.constant 0 : i32
    return %arg0, %c0_i32 : i32, i32
  }
  func.func @transform_4(%arg0: i32) -> (i32, i32) {
    %c0_i32 = arith.constant 0 : i32
    %c0_i32_0 = arith.constant 0 : i32
    return %arg0, %c0_i32 : i32, i32
  }
  func.func @transform_5(%arg0: i32) -> (i32, i32) {
    %c0_i32 = arith.constant 0 : i32
    %c0_i32_0 = arith.constant 0 : i32
    return %arg0, %c0_i32 : i32, i32
  }
  func.func @transform_6(%arg0: i32) -> (i32, i32) {
    %c0_i32 = arith.constant 0 : i32
    %c0_i32_0 = arith.constant 0 : i32
    return %arg0, %c0_i32 : i32, i32
  }
}

</mosaic_0001>

<bundles_post_ra>
// kernel: tpu_custom_call.1
= control target key start
LH: loop header
LB: loop body
LE: loop exit
PB: predicated region body
PF: predicated region fallthrough
CT: control target
= control target key end

     0   :  { %12 = vsyncpa [#allocation3], 0  ;;  %s1586_s0 = inlined_call_operand.hbm [shape: f32[4,32], index: 0, kind: input, shape index: {}]   ;;  %s1587_s1 = inlined_call_operand.hbm [shape: f32[4,32,32], index: 1, kind: input, shape index: {}]   ;;  %s1588_s2 = inlined_call_operand.hbm [shape: f32[4,32,32], index: 2, kind: input, shape index: {}]   ;;  %s1589_s3 = inlined_call_operand.vmem [shape: f32[4,32], index: 3, kind: input, shape index: {}]   ;;  %s1590_s4 = inlined_call_operand.hbm [shape: f32[4,32], index: 4, kind: input, shape index: {}]   ;;  %s1591_s5 = inlined_call_operand.hbm [shape: f32[4,32], index: 5, kind: output, shape index: {0}]   ;;  %s1592_s6 = inlined_call_operand.hbm [shape: f32[4,32], index: 6, kind: output, shape index: {1}]  }
   0x1   :  { %13 = vsyncpa [#allocation6], 0 }
   0x2   :  { %14 = vsyncpa [#allocation9], 0 }
   0x3   :  { %15 = vsyncpa [#allocation4], 0 }
   0x4   :  { %16 = vsyncpa [#allocation12], 0  ;;  %s1296_s21 = smov [#allocation5]  }
   0x5   :  { %s32_s22 = sshll.u32 %s1296_s21, 4  ;;  %s33_s22 = int_to_ptr.vmem [resolvable:$true] %s32_s22 }
   0x6   :  { %s1174_s23 = scalar_lea.vmem %s33_s22, 2048  ;;  %p1179_p1 = scmp.lt.s32.totalorder %s33_s22, %s33_s22 }
   0x7   :  { %p1175_p0 = scmp.ne.s32.totalorder %s33_s22, %s1174_s23  ;;  %p1180_p2 = scmp.lt.s32.totalorder %s1174_s23, %s1174_s23 }
   0x9   :  { %p1181_p3 = por %p1180_p2, %p1179_p1 }
   0xb   :  { %p1182_p4 = pnand %p1181_p3, %p1175_p0 }
   0xd   :  { %1185 = shalt.err (!%p1182_p4)
}
   0xe   :  { %s1297_s24 = smov 128   ;;  %s1298_s25 = smov 8  }
   0xf   :  { %38 = dma.hbm_to_vmem [thread:$0]  %s1587_s1, 2048, %s33_s22, [#allocation6], %s1297_s24, %s1297_s24, %s1298_s25  }
  0x10   :  { %s1299_s28 = smov [#allocation2]   ;;  %s1300_s30 = smov [#allocation7]  }
  0x11   :  { %s23_s29 = sshll.u32 %s1299_s28, 4  ;;  %s44_s7 = sshll.u32 %s1300_s30, 4  ;;  %s24_s29 = int_to_ptr.vmem [resolvable:$true] %s23_s29  ;;  %s45_s7 = int_to_ptr.vmem [resolvable:$true] %s44_s7 }
  0x12   :  { %s1194_s8 = scalar_lea.vmem %s24_s29, 64  ;;  %p1199_p6 = scmp.lt.s32.totalorder %s24_s29, %s24_s29 }
  0x13   :  { %p1195_p5 = scmp.ne.s32.totalorder %s24_s29, %s1194_s8  ;;  %p1200_p7 = scmp.lt.s32.totalorder %s1194_s8, %s1194_s8 }
  0x15   :  { %p1201_p8 = por %p1200_p7, %p1199_p6 }
  0x17   :  { %p1202_p9 = pnand %p1201_p8, %p1195_p5 }
  0x19   :  { %1205 = shalt.err (!%p1202_p9)
}
  0x1a   :  { %26 = dma.hbm_to_vmem [thread:$0]  %s1586_s0, 64, %s24_s29, [#allocation3]  }
  0x1b   :  { %s1214_s11 = scalar_lea.vmem %s45_s7, 2048  ;;  %p1219_p11 = scmp.lt.s32.totalorder %s45_s7, %s45_s7 }
  0x1c   :  { %p1215_p10 = scmp.ne.s32.totalorder %s45_s7, %s1214_s11  ;;  %p1220_p12 = scmp.lt.s32.totalorder %s1214_s11, %s1214_s11 }
  0x1e   :  { %p1221_p13 = por %p1220_p12, %p1219_p11 }
  0x20   :  { %p1222_p0 = pnand %p1221_p13, %p1215_p10 }
  0x22   :  { %1225 = shalt.err (!%p1222_p0)
}
  0x23   :  { %50 = dma.hbm_to_vmem [thread:$0]  %s1588_s2, 2048, %s45_s7, [#allocation6], %s1297_s24, %s1297_s24, %s1298_s25  }
  0x24   :  { %s1301_s13 = smov [#allocation8]  }
  0x25   :  { %s59_s14 = sshll.u32 %s1301_s13, 4  ;;  %s60_s14 = int_to_ptr.vmem [resolvable:$true] %s59_s14 }
  0x26   :  { %s1234_s15 = scalar_lea.vmem %s60_s14, 64  ;;  %p1239_p2 = scmp.lt.s32.totalorder %s60_s14, %s60_s14 }
  0x27   :  { %p1235_p1 = scmp.ne.s32.totalorder %s60_s14, %s1234_s15  ;;  %p1240_p3 = scmp.lt.s32.totalorder %s1234_s15, %s1234_s15 }
  0x29   :  { %p1241_p4 = por %p1240_p3, %p1239_p2 }
  0x2b   :  { %p1242_p5 = pnand %p1241_p4, %p1235_p1 }
  0x2d   :  { %1245 = shalt.err (!%p1242_p5)
}
  0x2e   :  { %62 = dma.hbm_to_vmem [thread:$0]  %s1590_s4, 64, %s60_s14, [#allocation9]  }
  0x2f   :  { %1286 = dma.done.wait [#allocation3], 64  }
  0x30   :  { %1287 = vsyncadd [#allocation3], 4294967232 }
  0x31   :  { %1288 = dma.done.wait [#allocation6], 4096  }
  0x32   :  { %1289 = vsyncadd [#allocation6], 4294963200 }
  0x33   :  { %1290 = dma.done.wait [#allocation9], 64  }
  0x34   :  { %1291 = vsyncadd [#allocation9], 4294967232  ;;  %v97_v0 = vlaneseq  ;;  %v1302_v1 = vmov 1966171168   ;;  %v79_v16 = vld [vmem:[#allocation7 + $0x10] sm:$0xff]  ;;  %v77_v19 = vld [vmem:[#allocation7] sm:$0xff] }
  0x35   :  { %v95_v2 = vunpack.c.l.s4 %v1302_v1  ;;  %v1165_v13 = vld.sshfl [vmem:[#allocation2] sm:$0x33 pattern:$0x75316420]  ;;  %v78_v21 = vld [vmem:[#allocation7 + $0x8] sm:$0xff]  ;;  %vm154_vm0 = vcmask 261120  }
  0x36   :  { %v1353_v3 = vshrl.u32 %v97_v0, 7  ;;  %v409_v4 = vand.u32 127, %v97_v0  ;;  %v101_v18 = vcombine.high %v1165_v13, %v1165_v13  ;;  %v80_v20 = vld [vmem:[#allocation7 + $0x18] sm:$0xff]  ;;  %v82_v28 = vld [vmem:[#allocation7 + $0x28] sm:$0xff]  ;;  %v81_v30 = vld [vmem:[#allocation7 + $0x20] sm:$0xff]  ;;  %vm419_vm1 = vcmask 130112  }
  0x37   :  { %v96_v5 = vunpack.c.0.s8 %v95_v2  ;;  %v84_v38 = vld [vmem:[#allocation7 + $0x38] sm:$0xff]  ;;  %v83_v39 = vld [vmem:[#allocation7 + $0x30] sm:$0xff]  ;;  %v86_v45 = vld [vmem:[#allocation7 + $0x48] sm:$0xff]  ;;  %vm426_vm2 = vcmask 195712   ;;  %vm433_vm3 = vcmask 261312   ;;  %vm492_vm4 = vcmask 1041409  }
  0x38   :  { %v1356_v6 = vsub.s32 %v409_v4, %v1353_v3  ;;  %v414_v7 = vadd.s32 4294967288, %v409_v4  ;;  %v421_v8 = vadd.s32 4294967280, %v409_v4  ;;  %v428_v10 = vadd.s32 4294967272, %v409_v4  ;;  %v85_v46 = vld [vmem:[#allocation7 + $0x40] sm:$0xff]  ;;  %v88_v52 = vld [vmem:[#allocation7 + $0x58] sm:$0xff]  ;;  %v87_v53 = vld [vmem:[#allocation7 + $0x50] sm:$0xff] }
  0x39   :  { %v99_v9 = vsub.s32 %v96_v5, %v1353_v3  ;;  %v1369_v15 = vsub.s32 0, %v1353_v3  ;;  %v90_v59 = vld [vmem:[#allocation7 + $0x68] sm:$0xff]  ;;  %v89_v60 = vld [vmem:[#allocation7 + $0x60] sm:$0xff]  ;;  %v92_v1 = vld [vmem:[#allocation7 + $0x78] sm:$0xff]  ;;  %vm493_vm5 = vcmask 1042434   ;;  %vm495_vm6 = vcmask 1043459  }
  0x3a   :  { %v1360_v11 = vsub.s32 %v414_v7, %v1353_v3  ;;  %v1363_v12 = vsub.s32 %v421_v8, %v1353_v3  ;;  %v1366_v14 = vsub.s32 %v428_v10, %v1353_v3  ;;  %v91_v2 = vld [vmem:[#allocation7 + $0x70] sm:$0xff]  ;;  %vm688_vm7 = vcmask 257024   ;;  %s1305_s18 = smov [#allocation11]  }
  0x3b   :  { %v108_v17 = vrot.slane %v1165_v13, %v99_v9  ;;  %v115_v23 = vrot.slane %v101_v18, %v99_v9  ;;  %v76_v13 = vld [vmem:[%s1589_s3] sm:$0xf]  ;;  %s1304_s3 = smov [#allocation10]   ;;  %s1073_s19 = sshll.u32 %s1305_s18, 4  ;;  %s1074_s19 = int_to_ptr.vmem [resolvable:$true] %s1073_s19 }
  0x3c   :  { %s1063_s17 = sshll.u32 %s1304_s3, 4  ;;  %s1064_s17 = int_to_ptr.vmem [resolvable:$true] %s1063_s17 }
  0x3d   :  { %v121_v22 = vrot.slane %v108_v17, %v1369_v15  ;;  %v125_v29 = vrot.slane %v115_v23, %v1369_v15  ;;  %v116_v33 = vcombine.high %v108_v17, %v108_v17  ;;  %v117_v47 = vcombine.high %v115_v23, %v115_v23  ;;  %s1246_s20 = scalar_lea.vmem %s1064_s17, 64  ;;  %p1251_p7 = scmp.lt.s32.totalorder %s1064_s17, %s1064_s17 }
  0x3e   :  { %v225_v17 = vsub.s32 1, %v1353_v3  ;;  %p1247_p6 = scmp.ne.s32.totalorder %s1064_s17, %s1246_s20  ;;  %p1252_p8 = scmp.lt.s32.totalorder %s1246_s20, %s1246_s20 }
  0x3f   :  { %v140_v24 = vmul.f32 %v121_v22, %v79_v16  ;;  %v138_v25 = vmul.f32 %v121_v22, %v77_v19  ;;  %v141_v26 = vmul.f32 %v121_v22, %v80_v20  ;;  %v139_v27 = vmul.f32 %v121_v22, %v78_v21 }
  0x40   :  { %v143_v36 = vmul.f32 %v125_v29, %v82_v28  ;;  %v142_v37 = vmul.f32 %v125_v29, %v81_v30  ;;  %v129_v40 = vrot.slane %v116_v33, %v1369_v15  ;;  %v145_v43 = vmul.f32 %v125_v29, %v84_v38  ;;  %p1253_p9 = por %p1252_p8, %p1251_p7 }
  0x41   :  { %v161_v31 = vsel %vm154_vm0, %v140_v24, 0.0  ;;  %v155_v32 = vsel %vm154_vm0, %v138_v25, 0.0  ;;  %v164_v34 = vsel %vm154_vm0, %v141_v26, 0.0  ;;  %v158_v35 = vsel %vm154_vm0, %v139_v27, 0.0  ;;  %v722_v24 = vld [vmem:[#allocation8] sm:$0xf] }
  0x42   :  { %162 = vadd.xlane.f32.xlu1 %v161_v31  ;;  %156 = vadd.xlane.f32.xlu0 %v155_v32  ;;  %v170_v41 = vsel %vm154_vm0, %v143_v36, 0.0  ;;  %v167_v42 = vsel %vm154_vm0, %v142_v37, 0.0  ;;  %v144_v44 = vmul.f32 %v125_v29, %v83_v39  ;;  %v176_v48 = vsel %vm154_vm0, %v145_v43, 0.0  ;;  %p1254_p10 = pnand %p1253_p9, %p1247_p6 }
  0x43   :  { %v147_v50 = vmul.f32 %v129_v40, %v86_v45  ;;  %v146_v51 = vmul.f32 %v129_v40, %v85_v46  ;;  %v149_v54 = vmul.f32 %v129_v40, %v88_v52  ;;  %v148_v57 = vmul.f32 %v129_v40, %v87_v53 }
  0x44   :  { %v173_v49 = vsel %vm154_vm0, %v144_v44, 0.0  ;;  %v133_v58 = vrot.slane %v117_v47, %v1369_v15  ;;  %v207_v16 = vrot.slane %v76_v13, %v1369_v15  ;;  %v226_v18 = vrot.slane %v76_v13, %v225_v17 }
  0x45   :  { %v182_v55 = vsel %vm154_vm0, %v147_v50, 0.0  ;;  %v179_v56 = vsel %vm154_vm0, %v146_v51, 0.0  ;;  %v188_v61 = vsel %vm154_vm0, %v149_v54, 0.0  ;;  %v185_v62 = vsel %vm154_vm0, %v148_v57, 0.0 }
  0x46   :  { %165 = vadd.xlane.f32.xlu1 %v164_v34  ;;  %159 = vadd.xlane.f32.xlu0 %v158_v35  ;;  %v151_v63 = vmul.f32 %v133_v58, %v90_v59  ;;  %v150_v0 = vmul.f32 %v133_v58, %v89_v60  ;;  %v153_v7 = vmul.f32 %v133_v58, %v92_v1  ;;  %v244_v19 = vsub.s32 2, %v1353_v3 }
  0x47   :  { %v152_v8 = vmul.f32 %v133_v58, %v91_v2  ;;  %v1303_v21 = vmov 0   ;;  %v263_v22 = vsub.s32 3, %v1353_v3  ;;  %v727_v25 = vrot.slane %v722_v24, %v1369_v15 }
  0x48   :  { %v194_v4 = vsel %vm154_vm0, %v151_v63, 0.0  ;;  %v191_v5 = vsel %vm154_vm0, %v150_v0, 0.0  ;;  %v200_v9 = vsel %vm154_vm0, %v153_v7, 0.0  ;;  %v245_v20 = vrot.slane %v76_v13, %v244_v19  ;;  %1099 = vset.pattern.permute.xlu1 %v1303_v21  ;;  %1098 = vset.pattern.permute.xlu0 %v1303_v21 }
  0x49   :  { %v197_v10 = vsel %vm154_vm0, %v152_v8, 0.0  ;;  %v264_v23 = vrot.slane %v76_v13, %v263_v22  ;;  %v746_v26 = vrot.slane %v722_v24, %v225_v17  ;;  %v765_v27 = vrot.slane %v722_v24, %v244_v19 }
  0x4a   :  { %171 = vadd.xlane.f32.xlu1 %v170_v41  ;;  %168 = vadd.xlane.f32.xlu0 %v167_v42  ;;  %v784_v3 = vrot.slane %v722_v24, %v263_v22 }
  0x4e   :  { %177 = vadd.xlane.f32.xlu1 %v176_v48  ;;  %174 = vadd.xlane.f32.xlu0 %v173_v49 }
  0x52   :  { %183 = vadd.xlane.f32.xlu1 %v182_v55  ;;  %180 = vadd.xlane.f32.xlu0 %v179_v56 }
  0x56   :  { %189 = vadd.xlane.f32.xlu1 %v188_v61  ;;  %186 = vadd.xlane.f32.xlu0 %v185_v62 }
  0x5a   :  { %195 = vadd.xlane.f32.xlu1 %v194_v4  ;;  %192 = vadd.xlane.f32.xlu0 %v191_v5 }
  0x5e   :  { %201 = vadd.xlane.f32.xlu1 %v200_v9  ;;  %198 = vadd.xlane.f32.xlu0 %v197_v10 }
  0x6f   :  { %213 = vbcast.lane.b32.xlu1 %v207_v16, 264 }
  0x73   :  { %217 = vbcast.lane.b32.xlu1 %v207_v16, 272 }
  0x74   :  { %209 = vbcast.lane.b32.xlu0 %v207_v16, 256 }
  0x77   :  { %221 = vbcast.lane.b32.xlu1 %v207_v16, 280 }
  0x78   :  { %228 = vbcast.lane.b32.xlu0 %v226_v18, 256 }
  0x7b   :  { %232 = vbcast.lane.b32.xlu1 %v226_v18, 264 }
  0x7c   :  { %236 = vbcast.lane.b32.xlu0 %v226_v18, 272 }
  0x7f   :  { %240 = vbcast.lane.b32.xlu1 %v226_v18, 280 }
  0x80   :  { %247 = vbcast.lane.b32.xlu0 %v245_v20, 256 }
  0x83   :  { %251 = vbcast.lane.b32.xlu1 %v245_v20, 264 }
  0x84   :  { %255 = vbcast.lane.b32.xlu0 %v245_v20, 272 }
  0x87   :  { %259 = vbcast.lane.b32.xlu1 %v245_v20, 280 }
  0x88   :  { %266 = vbcast.lane.b32.xlu0 %v264_v23, 256 }
  0x8b   :  { %270 = vbcast.lane.b32.xlu1 %v264_v23, 264 }
  0x8c   :  { %274 = vbcast.lane.b32.xlu0 %v264_v23, 272 }
  0x8f   :  { %278 = vbcast.lane.b32.xlu1 %v264_v23, 280 }
  0x90   :  { %733 = vbcast.lane.b32.xlu0 %v727_v25, 264 }
  0x93   :  { %729 = vbcast.lane.b32.xlu1 %v727_v25, 256 }
  0x94   :  { %752 = vbcast.lane.b32.xlu0 %v746_v26, 264 }
  0x97   :  { %748 = vbcast.lane.b32.xlu1 %v746_v26, 256 }
  0x98   :  { %756 = vbcast.lane.b32.xlu0 %v746_v26, 272 }
  0x9b   :  { %737 = vbcast.lane.b32.xlu1 %v727_v25, 272 }
  0x9c   :  { %771 = vbcast.lane.b32.xlu0 %v765_v27, 264 }
  0x9f   :  { %767 = vbcast.lane.b32.xlu1 %v765_v27, 256 }
  0xa0   :  { %760 = vbcast.lane.b32.xlu0 %v746_v26, 280 }
  0xa3   :  { %741 = vbcast.lane.b32.xlu1 %v727_v25, 280 }
  0xa4   :  { %786 = vbcast.lane.b32.xlu0 %v784_v3, 256 }
  0xa7   :  { %775 = vbcast.lane.b32.xlu1 %v765_v27, 272 }
  0xa8   :  { %779 = vbcast.lane.b32.xlu0 %v765_v27, 280 }
  0xab   :  { %790 = vbcast.lane.b32.xlu1 %v784_v3, 264 }
  0xac   :  { %798 = vbcast.lane.b32.xlu0 %v784_v3, 280 }
  0xaf   :  { %794 = vbcast.lane.b32.xlu1 %v784_v3, 272 }
  0xcb   :  { %v163_v15 = vpop.xlane.xlu1 %162  ;;  %v157_v28 = vpop.xlane.xlu0 %156 }
  0xcf   :  { %v166_v29 = vpop.xlane.xlu1 %165  ;;  %v160_v30 = vpop.xlane.xlu0 %159 }
  0xd3   :  { %v172_v31 = vpop.xlane.xlu1 %171  ;;  %v169_v32 = vpop.xlane.xlu0 %168 }
  0xd7   :  { %v178_v33 = vpop.xlane.xlu1 %177  ;;  %v175_v34 = vpop.xlane.xlu0 %174 }
  0xdb   :  { %v184_v35 = vpop.xlane.xlu1 %183  ;;  %v181_v36 = vpop.xlane.xlu0 %180 }
  0xdf   :  { %v190_v37 = vpop.xlane.xlu1 %189  ;;  %v187_v38 = vpop.xlane.xlu0 %186 }
  0xe3   :  { %v196_v39 = vpop.xlane.xlu1 %195  ;;  %v193_v40 = vpop.xlane.xlu0 %192 }
  0xe7   :  { %v1399_v41 = vpop.xlane.xlu1 %201  ;;  %v199_v42 = vpop.xlane.xlu0 %198 }
  0xeb   :  { %v214_v43 = vpop.permute.xlu1 %213  ;;  %v210_v44 = vpop.permute.xlu0 %209 }
  0xec   :  { %v297_v45 = vadd.f32 %v214_v43, %v160_v30  ;;  %v296_v46 = vadd.f32 %v210_v44, %v157_v28 }
  0xee   :  { %1100 = vtanh.f32 %v297_v45 }
  0xef   :  { %1102 = vtanh.f32 %v296_v46  ;;  %v218_v47 = vpop.permute.xlu1 %217  ;;  %v229_v48 = vpop.permute.xlu0 %228 }
  0xf0   :  { %v298_v49 = vadd.f32 %v218_v47, %v163_v15  ;;  %v300_v50 = vadd.f32 %v229_v48, %v169_v32 }
  0xf2   :  { %1104 = vtanh.f32 %v298_v49 }
  0xf3   :  { %v222_v51 = vpop.permute.xlu1 %221  ;;  %v237_v52 = vpop.permute.xlu0 %236  ;;  %1106 = vtanh.f32 %v300_v50 }
  0xf4   :  { %v299_v53 = vadd.f32 %v222_v51, %v166_v29  ;;  %v302_v54 = vadd.f32 %v237_v52, %v175_v34 }
  0xf6   :  { %1108 = vtanh.f32 %v299_v53 }
  0xf7   :  { %v233_v55 = vpop.permute.xlu1 %232  ;;  %v248_v56 = vpop.permute.xlu0 %247  ;;  %1110 = vtanh.f32 %v302_v54 }
  0xf8   :  { %v301_v57 = vadd.f32 %v233_v55, %v172_v31  ;;  %v304_v58 = vadd.f32 %v248_v56, %v181_v36 }
  0xfa   :  { %1112 = vtanh.f32 %v301_v57 }
  0xfb   :  { %v1101_v59 = vpop.eup %1100  ;;  %v241_v60 = vpop.permute.xlu1 %240  ;;  %1114 = vtanh.f32 %v304_v58 }
  0xfc   :  { %v256_v61 = vpop.permute.xlu0 %255  ;;  %v1103_v62 = vpop.eup %1102  ;;  %v303_v63 = vadd.f32 %v241_v60, %v178_v33  ;;  %364 = vperm.xlu1 %1099, %v1101_v59   ;;  %v691_v9 = vmul.f32 %v1101_v59, %v1101_v59 }
  0xfd   :  { %v306_v0 = vadd.f32 %v256_v61, %v187_v38  ;;  %361 = vperm.xlu0 %1098, %v1103_v62   ;;  %v690_v3 = vmul.f32 %v1103_v62, %v1103_v62 }
  0xfe   :  { %1116 = vtanh.f32 %v303_v63  ;;  %v707_v20 = vsub.f32 1.0, %v691_v9 }
  0xff   :  { %v1105_v1 = vpop.eup %1104  ;;  %v252_v2 = vpop.permute.xlu1 %251  ;;  %1118 = vtanh.f32 %v306_v0 }
 0x100   :  { %v267_v4 = vpop.permute.xlu0 %266  ;;  %v305_v5 = vadd.f32 %v252_v2, %v184_v35  ;;  %367 = vperm.xlu1 %1099, %v1105_v1   ;;  %v1107_v8 = vpop.eup %1106  ;;  %v706_v35 = vsub.f32 1.0, %v690_v3  ;;  %v692_v46 = vmul.f32 %v1105_v1, %v1105_v1 }
 0x101   :  { %v308_v7 = vadd.f32 %v267_v4, %v193_v40  ;;  %v694_v54 = vmul.f32 %v1107_v8, %v1107_v8 }
 0x102   :  { %1120 = vtanh.f32 %v305_v5  ;;  %v708_v60 = vsub.f32 1.0, %v692_v46 }
 0x103   :  { %v1401_v10 = vpop.eup %1108  ;;  %v260_v13 = vpop.permute.xlu1 %259  ;;  %1122 = vtanh.f32 %v308_v7  ;;  %v710_v4 = vsub.f32 1.0, %v694_v54 }
 0x104   :  { %v275_v16 = vpop.permute.xlu0 %274  ;;  %v307_v17 = vadd.f32 %v260_v13, %v190_v37  ;;  %370 = vperm.xlu0 %1098, %v1401_v10   ;;  %373 = vperm.xlu1 %1099, %v1107_v8   ;;  %v1111_v19 = vpop.eup %1110  ;;  %v693_v13 = vmul.f32 %v1401_v10, %v1401_v10 }
 0x105   :  { %v310_v18 = vadd.f32 %v275_v16, %v199_v42  ;;  %v696_v15 = vmul.f32 %v1111_v19, %v1111_v19 }
 0x106   :  { %1124 = vtanh.f32 %v307_v17 }
 0x107   :  { %v1113_v21 = vpop.eup %1112  ;;  %v271_v22 = vpop.permute.xlu1 %270  ;;  %1126 = vtanh.f32 %v310_v18  ;;  %v712_v36 = vsub.f32 1.0, %v696_v15 }
 0x108   :  { %v734_v23 = vpop.permute.xlu0 %733  ;;  %v309_v24 = vadd.f32 %v271_v22, %v196_v39  ;;  %376 = vperm.xlu0 %1098, %v1113_v21   ;;  %379 = vperm.xlu1 %1099, %v1111_v19   ;;  %v1404_v26 = vpop.eup %1114  ;;  %v695_v55 = vmul.f32 %v1113_v21, %v1113_v21 }
 0x109   :  { %v817_v25 = vmul.f32 %v734_v23, %v707_v20  ;;  %v698_v23 = vmul.f32 %v1404_v26, %v1404_v26 }
 0x10a   :  { %1128 = vtanh.f32 %v309_v24  ;;  %v711_v8 = vsub.f32 1.0, %v695_v55 }
 0x10b   :  { %v833_v27 = vadd.f32 1.0, %v817_v25  ;;  %v1117_v28 = vpop.eup %1116  ;;  %v279_v29 = vpop.permute.xlu1 %278 }
 0x10c   :  { %v1406_v30 = vpop.permute.xlu0 %752  ;;  %v311_v32 = vadd.f32 %v279_v29, %v1399_v41  ;;  %382 = vperm.xlu0 %1098, %v1117_v28   ;;  %385 = vperm.xlu1 %1099, %v1404_v26   ;;  %v1410_v33 = vpop.eup %1118  ;;  %v697_v47 = vmul.f32 %v1117_v28, %v1117_v28  ;;  %v709_v29 = vsub.f32 1.0, %v693_v13 }
 0x10d   :  { %v849_v31 = vand.u32 2147483647, %v833_v27  ;;  %v821_v10 = vmul.f32 %v1406_v30, %v711_v8 }
 0x10e   :  { %1130 = vtanh.f32 %v311_v32  ;;  %v713_v61 = vsub.f32 1.0, %v697_v47 }
 0x10f   :  { %v865_v34 = vadd.f32 1e-08, %v849_v31  ;;  %v1121_v37 = vpop.eup %1120  ;;  %v730_v38 = vpop.permute.xlu1 %729 }
 0x110   :  { %v757_v39 = vpop.permute.xlu0 %756  ;;  %v816_v40 = vmul.f32 %v730_v38, %v706_v35  ;;  %388 = vperm.xlu0 %1098, %v1121_v37   ;;  %391 = vperm.xlu1 %1099, %v1410_v33   ;;  %v699_v43 = vmul.f32 %v1121_v37, %v1121_v37  ;;  %v1123_v41 = vpop.eup %1122 }
 0x111   :  { %1132 = vlog2.f32 %v865_v34  ;;  %v822_v42 = vmul.f32 %v757_v39, %v712_v36  ;;  %v702_v2 = vmul.f32 %v1123_v41, %v1123_v41  ;;  %v714_v36 = vsub.f32 1.0, %v698_v23 }
 0x112   :  { %v832_v44 = vadd.f32 1.0, %v816_v40  ;;  %v715_v50 = vsub.f32 1.0, %v699_v43  ;;  %v700_v43 = vmul.f32 %v1410_v33, %v1410_v33 }
 0x113   :  { %v838_v45 = vadd.f32 1.0, %v822_v42  ;;  %v1125_v48 = vpop.eup %1124  ;;  %v749_v49 = vpop.permute.xlu1 %748  ;;  %v718_v24 = vsub.f32 1.0, %v702_v2 }
 0x114   :  { %v772_v51 = vpop.permute.xlu0 %771  ;;  %v848_v52 = vand.u32 2147483647, %v832_v44  ;;  %394 = vperm.xlu0 %1098, %v1125_v48   ;;  %397 = vperm.xlu1 %1099, %v1123_v41   ;;  %v1413_v57 = vpop.eup %1126  ;;  %v820_v16 = vmul.f32 %v749_v49, %v710_v4  ;;  %v701_v19 = vmul.f32 %v1125_v48, %v1125_v48  ;;  %v837_v41 = vadd.f32 1.0, %v821_v10 }
 0x115   :  { %v854_v53 = vand.u32 2147483647, %v838_v45  ;;  %v825_v56 = vmul.f32 %v772_v51, %v715_v50  ;;  %v716_v51 = vsub.f32 1.0, %v700_v43 }
 0x116   :  { %v864_v58 = vadd.f32 1e-08, %v848_v52  ;;  %v836_v31 = vadd.f32 1.0, %v820_v16  ;;  %v717_v35 = vsub.f32 1.0, %v701_v19  ;;  %v853_v54 = vand.u32 2147483647, %v837_v41 }
 0x117   :  { %v870_v59 = vadd.f32 1e-08, %v854_v53  ;;  %v1129_v62 = vpop.eup %1128  ;;  %v841_v63 = vadd.f32 1.0, %v825_v56  ;;  %v738_v0 = vpop.permute.xlu1 %737 }
 0x118   :  { %v761_v1 = vpop.permute.xlu0 %760  ;;  %1134 = vlog2.f32 %v864_v58  ;;  %v818_v5 = vmul.f32 %v738_v0, %v708_v60  ;;  %400 = vperm.xlu0 %1098, %v1129_v62   ;;  %403 = vperm.xlu1 %1099, %v1413_v57   ;;  %v852_v44 = vand.u32 2147483647, %v836_v31  ;;  %v703_v52 = vmul.f32 %v1129_v62, %v1129_v62 }
 0x119   :  { %v823_v7 = vmul.f32 %v761_v1, %v713_v61  ;;  %1136 = vlog2.f32 %v870_v59  ;;  %v857_v9 = vand.u32 2147483647, %v841_v63  ;;  %v869_v62 = vadd.f32 1e-08, %v853_v54 }
 0x11a   :  { %v834_v17 = vadd.f32 1.0, %v818_v5  ;;  %v868_v58 = vadd.f32 1e-08, %v852_v44  ;;  %v719_v2 = vsub.f32 1.0, %v703_v52  ;;  %v329_v52 = vld [vmem:[#allocation5 + $0x8] sm:$0xff] }
 0x11b   :  { %v839_v18 = vadd.f32 1.0, %v823_v7  ;;  %v1418_v20 = vpop.eup %1130  ;;  %v873_v21 = vadd.f32 1e-08, %v857_v9  ;;  %v768_v22 = vpop.permute.xlu1 %767 }
 0x11c   :  { %v787_v25 = vpop.permute.xlu0 %786  ;;  %v850_v27 = vand.u32 2147483647, %v834_v17  ;;  %406 = vperm.xlu0 %1098, %v1418_v20   ;;  %v824_v30 = vmul.f32 %v768_v22, %v714_v36 }
 0x11d   :  { %v855_v3 = vand.u32 2147483647, %v839_v18  ;;  %1138 = vlog2.f32 %v873_v21  ;;  %v828_v28 = vmul.f32 %v787_v25, %v718_v24 }
 0x11e   :  { %v1133_v15 = vpop.eup %1132  ;;  %v866_v32 = vadd.f32 1e-08, %v850_v27  ;;  %v840_v55 = vadd.f32 1.0, %v824_v30 }
 0x11f   :  { %v871_v34 = vadd.f32 1e-08, %v855_v3  ;;  %v844_v37 = vadd.f32 1.0, %v828_v28  ;;  %v742_v38 = vpop.permute.xlu1 %741  ;;  %v883_v39 = vmul.f32 0.6931472, %v1133_v15 }
 0x120   :  { %v780_v26 = vpop.permute.xlu0 %779  ;;  %1140 = vlog2.f32 %v866_v32  ;;  %v819_v40 = vmul.f32 %v742_v38, %v709_v29  ;;  %v856_v4 = vand.u32 2147483647, %v840_v55 }
 0x121   :  { %v827_v42 = vmul.f32 %v780_v26, %v717_v35  ;;  %1142 = vlog2.f32 %v871_v34  ;;  %932 = vperm.xlu0 %1098, %v883_v39   ;;  %v860_v47 = vand.u32 2147483647, %v844_v37 }
 0x122   :  { %v835_v45 = vadd.f32 1.0, %v819_v40  ;;  %v872_v16 = vadd.f32 1e-08, %v856_v4 }
 0x123   :  { %v843_v46 = vadd.f32 1.0, %v827_v42  ;;  %v776_v48 = vpop.permute.xlu1 %775  ;;  %v876_v61 = vadd.f32 1e-08, %v860_v47 }
 0x124   :  { %v851_v49 = vand.u32 2147483647, %v835_v45  ;;  %v826_v60 = vmul.f32 %v776_v48, %v716_v51  ;;  %v1428_v43 = vpop.permute.xlu0 %798 }
 0x125   :  { %v859_v50 = vand.u32 2147483647, %v843_v46  ;;  %v1135_v53 = vpop.eup %1134 }
 0x126   :  { %v1137_v56 = vpop.eup %1136  ;;  %v867_v59 = vadd.f32 1e-08, %v851_v49  ;;  %v881_v0 = vmul.f32 0.6931472, %v1135_v53  ;;  %v842_v7 = vadd.f32 1.0, %v826_v60  ;;  %v328_v53 = vld [vmem:[#allocation5] sm:$0xff] }
 0x127   :  { %v875_v33 = vadd.f32 1e-08, %v859_v50  ;;  %v791_v63 = vpop.permute.xlu1 %790  ;;  %v893_v1 = vmul.f32 0.6931472, %v1137_v56  ;;  %v330_v56 = vld [vmem:[#allocation5 + $0x10] sm:$0xff] }
 0x128   :  { %1144 = vlog2.f32 %v867_v59  ;;  %929 = vperm.xlu1 %1099, %v881_v0   ;;  %v829_v8 = vmul.f32 %v791_v63, %v719_v2  ;;  %v858_v18 = vand.u32 2147483647, %v842_v7 }
 0x129   :  { %1146 = vlog2.f32 %v875_v33  ;;  %947 = vperm.xlu0 %1098, %v893_v1  }
 0x12a   :  { %v1139_v5 = vpop.eup %1138  ;;  %1148 = vlog2.f32 %v868_v58  ;;  %v845_v19 = vadd.f32 1.0, %v829_v8  ;;  %v874_v23 = vadd.f32 1e-08, %v858_v18 }
 0x12b   :  { %1150 = vlog2.f32 %v876_v61  ;;  %v899_v9 = vmul.f32 0.6931472, %v1139_v5  ;;  %v1426_v42 = vpop.permute.xlu1 %794  ;;  %v331_v5 = vld [vmem:[#allocation5 + $0x18] sm:$0xff] }
 0x12c   :  { %1152 = vlog2.f32 %v869_v62  ;;  %v861_v24 = vand.u32 2147483647, %v845_v19  ;;  %v704_v19 = vmul.f32 %v1413_v57, %v1413_v57 }
 0x12d   :  { %v1141_v13 = vpop.eup %1140  ;;  %956 = vperm.xlu0 %1098, %v899_v9   ;;  %1154 = vlog2.f32 %v872_v16  ;;  %v332_v16 = vld [vmem:[#allocation5 + $0x20] sm:$0xff] }
 0x12e   :  { %v1143_v17 = vpop.eup %1142  ;;  %v885_v21 = vmul.f32 0.6931472, %v1141_v13  ;;  %1156 = vlog2.f32 %v874_v23  ;;  %v877_v3 = vadd.f32 1e-08, %v861_v24  ;;  %v334_v23 = vld [vmem:[#allocation5 + $0x30] sm:$0xff] }
 0x12f   :  { %v895_v22 = vmul.f32 0.6931472, %v1143_v17 }
 0x130   :  { %935 = vperm.xlu1 %1099, %v885_v21   ;;  %1158 = vlog2.f32 %v877_v3 }
 0x131   :  { %950 = vperm.xlu0 %1098, %v895_v22   ;;  %v333_v22 = vld [vmem:[#allocation5 + $0x28] sm:$0xff] }
 0x135   :  { %v1145_v25 = vpop.eup %1144 }
 0x136   :  { %v1147_v27 = vpop.eup %1146  ;;  %v887_v15 = vmul.f32 0.6931472, %v1145_v25 }
 0x137   :  { %v1149_v10 = vpop.eup %1148  ;;  %v903_v28 = vmul.f32 0.6931472, %v1147_v27 }
 0x138   :  { %v1151_v29 = vpop.eup %1150  ;;  %938 = vperm.xlu1 %1099, %v887_v15   ;;  %v889_v31 = vmul.f32 0.6931472, %v1149_v10 }
 0x139   :  { %962 = vperm.xlu0 %1098, %v903_v28   ;;  %v1153_v32 = vpop.eup %1152  ;;  %v905_v34 = vmul.f32 0.6931472, %v1151_v29 }
 0x13a   :  { %v891_v35 = vmul.f32 0.6931472, %v1153_v32  ;;  %v1155_v36 = vpop.eup %1154  ;;  %v335_v32 = vld [vmem:[#allocation5 + $0x38] sm:$0xff] }
 0x13b   :  { %v897_v37 = vmul.f32 0.6931472, %v1155_v36  ;;  %v1157_v38 = vpop.eup %1156 }
 0x13c   :  { %941 = vperm.xlu1 %1099, %v889_v31   ;;  %v901_v26 = vmul.f32 0.6931472, %v1157_v38 }
 0x13d   :  { %965 = vperm.xlu0 %1098, %v905_v34   ;;  %v1159_v39 = vpop.eup %1158  ;;  %v720_v34 = vsub.f32 1.0, %v704_v19 }
 0x13e   :  { %v907_v40 = vmul.f32 0.6931472, %v1159_v39 }
 0x13f   :  { %v830_v38 = vmul.f32 %v1426_v42, %v720_v34 }
 0x140   :  { %944 = vperm.xlu1 %1099, %v891_v35  }
 0x144   :  { %953 = vperm.xlu1 %1099, %v897_v37  }
 0x148   :  { %959 = vperm.xlu1 %1099, %v901_v26  }
 0x14c   :  { %968 = vperm.xlu1 %1099, %v907_v40   ;;  %v336_v40 = vld [vmem:[#allocation5 + $0x40] sm:$0xff] }
 0x177   :  { %v365_v41 = vpop.permute.xlu1 %364 }
 0x178   :  { %v362_v30 = vpop.permute.xlu0 %361  ;;  %v418_v45 = vrot.slane %v365_v41, %v1360_v11 }
 0x179   :  { %v413_v46 = vrot.slane %v362_v30, %v1356_v6 }
 0x17b   :  { %v368_v44 = vpop.permute.xlu1 %367  ;;  %v420_v50 = vsel %vm419_vm1, %v418_v45, %v413_v46  ;;  %v337_v46 = vld [vmem:[#allocation5 + $0x48] sm:$0xff] }
 0x17c   :  { %v425_v47 = vrot.slane %v368_v44, %v1363_v12 }
 0x17e   :  { %v427_v54 = vsel %vm426_vm2, %v425_v47, %v420_v50  ;;  %v338_v47 = vld [vmem:[#allocation5 + $0x50] sm:$0xff] }
 0x17f   :  { %v374_v48 = vpop.permute.xlu1 %373  ;;  %v371_v49 = vpop.permute.xlu0 %370 }
 0x180   :  { %v432_v51 = vrot.slane %v371_v49, %v1366_v14  ;;  %v438_v61 = vrot.slane %v374_v48, %v1356_v6  ;;  %v705_v48 = vmul.f32 %v1418_v20, %v1418_v20  ;;  %v339_v20 = vld [vmem:[#allocation5 + $0x58] sm:$0xff] }
 0x182   :  { %v434_v55 = vsel %vm433_vm3, %v432_v51, %v427_v54  ;;  %v846_v51 = vadd.f32 1.0, %v830_v38 }
 0x183   :  { %v380_v58 = vpop.permute.xlu1 %379  ;;  %v377_v59 = vpop.permute.xlu0 %376  ;;  %v528_v33 = vmul.f32 %v434_v55, %v329_v52  ;;  %v527_v60 = vmul.f32 %v434_v55, %v328_v53  ;;  %v529_v4 = vmul.f32 %v434_v55, %v330_v56  ;;  %v530_v13 = vmul.f32 %v434_v55, %v331_v5 }
 0x184   :  { %v442_v63 = vrot.slane %v377_v59, %v1360_v11  ;;  %v447_v0 = vrot.slane %v380_v58, %v1363_v12 }
 0x185   :  { %v546_v1 = vsel %vm154_vm0, %v528_v33, 0.0  ;;  %v543_v2 = vsel %vm154_vm0, %v527_v60, 0.0  ;;  %v549_v18 = vsel %vm154_vm0, %v529_v4, 0.0  ;;  %v552_v10 = vsel %vm154_vm0, %v530_v13, 0.0  ;;  %v342_v13 = vld [vmem:[#allocation5 + $0x70] sm:$0xff] }
 0x186   :  { %v443_v62 = vsel %vm419_vm1, %v442_v63, %v438_v61  ;;  %547 = vadd.xlane.f32.xlu0 %v546_v1  ;;  %544 = vadd.xlane.f32.xlu1 %v543_v2  ;;  %v721_v61 = vsub.f32 1.0, %v705_v48  ;;  %v862_v63 = vand.u32 2147483647, %v846_v51  ;;  %v340_v1 = vld [vmem:[#allocation5 + $0x60] sm:$0xff] }
 0x187   :  { %v386_v7 = vpop.permute.xlu1 %385  ;;  %v383_v8 = vpop.permute.xlu0 %382  ;;  %v448_v17 = vsel %vm426_vm2, %v447_v0, %v443_v62 }
 0x188   :  { %v452_v9 = vrot.slane %v383_v8, %v1366_v14  ;;  %v457_v3 = vrot.slane %v386_v7, %v1356_v6  ;;  %v831_v7 = vmul.f32 %v1428_v43, %v721_v61 }
 0x18a   :  { %v453_v21 = vsel %vm433_vm3, %v452_v9, %v448_v17  ;;  %550 = vadd.xlane.f32.xlu0 %v549_v18  ;;  %v341_v9 = vld [vmem:[#allocation5 + $0x68] sm:$0xff]  ;;  %v878_v17 = vadd.f32 1e-08, %v862_v63 }
 0x18b   :  { %v392_v24 = vpop.permute.xlu1 %391  ;;  %v389_v25 = vpop.permute.xlu0 %388  ;;  %v531_v27 = vmul.f32 %v453_v21, %v332_v16  ;;  %v532_v31 = vmul.f32 %v453_v21, %v333_v22  ;;  %v533_v57 = vmul.f32 %v453_v21, %v334_v23  ;;  %v534_v39 = vmul.f32 %v453_v21, %v335_v32 }
 0x18c   :  { %v461_v15 = vrot.slane %v389_v25, %v1360_v11  ;;  %v466_v28 = vrot.slane %v392_v24, %v1363_v12  ;;  %v847_v23 = vadd.f32 1.0, %v831_v7  ;;  %v343_v24 = vld [vmem:[#allocation5 + $0x78] sm:$0xff]  ;;  %1160 = vlog2.f32 %v878_v17 }
 0x18d   :  { %v555_v29 = vsel %vm154_vm0, %v531_v27, 0.0  ;;  %v558_v30 = vsel %vm154_vm0, %v532_v31, 0.0  ;;  %v561_v44 = vsel %vm154_vm0, %v533_v57, 0.0  ;;  %v564_v54 = vsel %vm154_vm0, %v534_v39, 0.0 }
 0x18e   :  { %v462_v35 = vsel %vm419_vm1, %v461_v15, %v457_v3  ;;  %553 = vadd.xlane.f32.xlu0 %v552_v10  ;;  %556 = vadd.xlane.f32.xlu1 %v555_v29  ;;  %v863_v3 = vand.u32 2147483647, %v847_v23 }
 0x18f   :  { %v398_v36 = vpop.permute.xlu1 %397  ;;  %v395_v37 = vpop.permute.xlu0 %394  ;;  %v467_v41 = vsel %vm426_vm2, %v466_v28, %v462_v35 }
 0x190   :  { %v471_v26 = vrot.slane %v395_v37, %v1366_v14  ;;  %v476_v52 = vrot.slane %v398_v36, %v1356_v6  ;;  %v879_v10 = vadd.f32 1e-08, %v863_v3 }
 0x192   :  { %v472_v45 = vsel %vm433_vm3, %v471_v26, %v467_v41  ;;  %559 = vadd.xlane.f32.xlu0 %v558_v30  ;;  %562 = vadd.xlane.f32.xlu1 %v561_v44  ;;  %1162 = vlog2.f32 %v879_v10 }
 0x193   :  { %v404_v42 = vpop.permute.xlu1 %403  ;;  %v401_v49 = vpop.permute.xlu0 %400  ;;  %v535_v50 = vmul.f32 %v472_v45, %v336_v40  ;;  %v536_v58 = vmul.f32 %v472_v45, %v337_v46  ;;  %v537_v59 = vmul.f32 %v472_v45, %v338_v47  ;;  %v538_v62 = vmul.f32 %v472_v45, %v339_v20 }
 0x194   :  { %v480_v53 = vrot.slane %v401_v49, %v1360_v11  ;;  %v485_v55 = vrot.slane %v404_v42, %v1363_v12 }
 0x195   :  { %v567_v56 = vsel %vm154_vm0, %v535_v50, 0.0  ;;  %v570_v4 = vsel %vm154_vm0, %v536_v58, 0.0  ;;  %v573_v5 = vsel %vm154_vm0, %v537_v59, 0.0  ;;  %v576_v18 = vsel %vm154_vm0, %v538_v62, 0.0 }
 0x196   :  { %v481_v33 = vsel %vm419_vm1, %v480_v53, %v476_v52  ;;  %565 = vadd.xlane.f32.xlu0 %v564_v54  ;;  %568 = vadd.xlane.f32.xlu1 %v567_v56 }
 0x197   :  { %v407_v60 = vpop.permute.xlu0 %406  ;;  %v486_v2 = vsel %vm426_vm2, %v485_v55, %v481_v33 }
 0x198   :  { %v490_v0 = vrot.slane %v407_v60, %v1366_v14 }
 0x199   :  { %v1161_v28 = vpop.eup %1160 }
 0x19a   :  { %v491_v8 = vsel %vm433_vm3, %v490_v0, %v486_v2  ;;  %571 = vadd.xlane.f32.xlu0 %v570_v4  ;;  %574 = vadd.xlane.f32.xlu1 %v573_v5  ;;  %v909_v29 = vmul.f32 0.6931472, %v1161_v28 }
 0x19b   :  { %v539_v16 = vmul.f32 %v491_v8, %v340_v1  ;;  %v540_v21 = vmul.f32 %v491_v8, %v341_v9  ;;  %v541_v22 = vmul.f32 %v491_v8, %v342_v13  ;;  %v542_v27 = vmul.f32 %v491_v8, %v343_v24 }
 0x19c   :  { %v1484_v35 = vpop.permute.xlu0 %932 }
 0x19d   :  { %v579_v19 = vsel %vm154_vm0, %v539_v16, 0.0  ;;  %v582_v43 = vsel %vm154_vm0, %v540_v21, 0.0  ;;  %v585_v25 = vsel %vm154_vm0, %v541_v22, 0.0  ;;  %v588_v15 = vsel %vm154_vm0, %v542_v27, 0.0 }
 0x19e   :  { %577 = vadd.xlane.f32.xlu0 %v576_v18  ;;  %580 = vadd.xlane.f32.xlu1 %v579_v19  ;;  %v983_v62 = vrot.slane %v1484_v35, %v1360_v11 }
 0x19f   :  { %v1163_v31 = vpop.eup %1162 }
 0x1a0   :  { %v911_v57 = vmul.f32 0.6931472, %v1163_v31 }
 0x1a2   :  { %583 = vadd.xlane.f32.xlu0 %v582_v43  ;;  %586 = vadd.xlane.f32.xlu1 %v585_v25 }
 0x1a3   :  { %v1480_v32 = vpop.permute.xlu1 %929 }
 0x1a4   :  { %v1488_v37 = vpop.permute.xlu0 %947  ;;  %v979_v22 = vrot.slane %v1480_v32, %v1356_v6 }
 0x1a6   :  { %589 = vadd.xlane.f32.xlu0 %v588_v15 }
 0x1a8   :  { %v1490_v26 = vpop.permute.xlu0 %956 }
 0x1ab   :  { %v1482_v34 = vpop.permute.xlu1 %935 }
 0x1ac   :  { %v1492_v40 = vpop.permute.xlu0 %950 }
 0x1b3   :  { %971 = vperm.xlu1 %1099, %v909_v29   ;;  %v1486_v36 = vpop.permute.xlu1 %938 }
 0x1b4   :  { %v1496_v30 = vpop.permute.xlu0 %962 }
 0x1b7   :  { %v942_v38 = vpop.permute.xlu1 %941 }
 0x1b8   :  { %v1500_v45 = vpop.permute.xlu0 %965  ;;  %v998_v23 = vrot.slane %v942_v38, %v1356_v6 }
 0x1bb   :  { %v945_v39 = vpop.permute.xlu1 %944 }
 0x1bc   :  { %974 = vperm.xlu0 %1098, %v911_v57   ;;  %v1002_v17 = vrot.slane %v945_v39, %v1360_v11  ;;  %v1007_v39 = vrot.slane %v1488_v37, %v1363_v12 }
 0x1be   :  { %v1003_v57 = vsel %vm419_vm1, %v1002_v17, %v998_v23 }
 0x1bf   :  { %v1494_v41 = vpop.permute.xlu1 %953 }
 0x1c0   :  { %v1017_v10 = vrot.slane %v1494_v41, %v1356_v6  ;;  %v1021_v41 = vrot.slane %v1490_v26, %v1360_v11 }
 0x1c2   :  { %v1022_v26 = vsel %vm419_vm1, %v1021_v41, %v1017_v10 }
 0x1c3   :  { %v1498_v44 = vpop.permute.xlu1 %959 }
 0x1c4   :  { %v1026_v32 = vrot.slane %v1498_v44, %v1363_v12  ;;  %v1012_v44 = vrot.slane %v1492_v40, %v1366_v14 }
 0x1c7   :  { %v1502_v46 = vpop.permute.xlu1 %968 }
 0x1c8   :  { %v1040_v40 = vrot.slane %v1502_v46, %v1360_v11 }
 0x20f   :  { %v548_v47 = vpop.xlane.xlu0 %547  ;;  %v545_v48 = vpop.xlane.xlu1 %544 }
 0x210   :  { %v610_v61 = vrot.slane %v545_v48, %v1356_v6  ;;  %v614_v1 = vrot.slane %v548_v47, %v1360_v11 }
 0x212   :  { %v615_v25 = vsel %vm419_vm1, %v614_v1, %v610_v61 }
 0x213   :  { %v551_v42 = vpop.xlane.xlu0 %550 }
 0x214   :  { %v619_v7 = vrot.slane %v551_v42, %v1363_v12  ;;  %v988_v42 = vrot.slane %v1482_v34, %v1363_v12  ;;  %v1027_v34 = vsel %vm426_vm2, %v1026_v32, %v1022_v26 }
 0x216   :  { %v620_v28 = vsel %vm426_vm2, %v619_v7, %v615_v25 }
 0x217   :  { %v557_v49 = vpop.xlane.xlu1 %556  ;;  %v554_v50 = vpop.xlane.xlu0 %553 }
 0x218   :  { %v629_v60 = vrot.slane %v557_v49, %v1356_v6  ;;  %v624_v18 = vrot.slane %v554_v50, %v1366_v14 }
 0x21a   :  { %v625_v35 = vsel %vm433_vm3, %v624_v18, %v620_v28 }
 0x21b   :  { %v563_v51 = vpop.xlane.xlu1 %562  ;;  %v560_v52 = vpop.xlane.xlu0 %559 }
 0x21c   :  { %v633_v58 = vrot.slane %v560_v52, %v1360_v11  ;;  %v638_v63 = vrot.slane %v563_v51, %v1363_v12  ;;  %v1008_v51 = vsel %vm426_vm2, %v1007_v39, %v1003_v57 }
 0x21e   :  { %v634_v2 = vsel %vm419_vm1, %v633_v58, %v629_v60 }
 0x21f   :  { %v569_v53 = vpop.xlane.xlu1 %568  ;;  %v566_v54 = vpop.xlane.xlu0 %565  ;;  %v639_v24 = vsel %vm426_vm2, %v638_v63, %v634_v2 }
 0x220   :  { %v648_v0 = vrot.slane %v569_v53, %v1356_v6  ;;  %v643_v4 = vrot.slane %v566_v54, %v1366_v14  ;;  %v993_v53 = vrot.slane %v1486_v36, %v1366_v14  ;;  %v1164_v54 = vld [vmem:[#allocation2] sm:$0xf]  ;;  %v1013_v36 = vsel %vm433_vm3, %v1012_v44, %v1008_v51 }
 0x222   :  { %v644_v27 = vsel %vm433_vm3, %v643_v4, %v639_v24 }
 0x223   :  { %v575_v55 = vpop.xlane.xlu1 %574  ;;  %v572_v56 = vpop.xlane.xlu0 %571  ;;  %v683_v47 = vsel %vm492_vm4, %v644_v27, %v625_v35 }
 0x224   :  { %v652_v59 = vrot.slane %v572_v56, %v1360_v11  ;;  %v657_v5 = vrot.slane %v575_v55, %v1363_v12  ;;  %v1031_v56 = vrot.slane %v1496_v30, %v1366_v14 }
 0x226   :  { %v653_v8 = vsel %vm419_vm1, %v652_v59, %v648_v0  ;;  %v984_v59 = vsel %vm419_vm1, %v983_v62, %v979_v22  ;;  %v1032_v46 = vsel %vm433_vm3, %v1031_v56, %v1027_v34 }
 0x227   :  { %v581_v33 = vpop.xlane.xlu1 %580  ;;  %v578_v20 = vpop.xlane.xlu0 %577  ;;  %v658_v3 = vsel %vm426_vm2, %v657_v5, %v653_v8 }
 0x228   :  { %v662_v9 = vrot.slane %v578_v20, %v1366_v14  ;;  %v667_v19 = vrot.slane %v581_v33, %v1356_v6  ;;  %v1036_v33 = vrot.slane %v1500_v45, %v1356_v6 }
 0x22a   :  { %v663_v29 = vsel %vm433_vm3, %v662_v9, %v658_v3 }
 0x22b   :  { %v587_v13 = vpop.xlane.xlu1 %586  ;;  %v584_v16 = vpop.xlane.xlu0 %583  ;;  %v684_v49 = vsel %vm493_vm5, %v663_v29, %v683_v47 }
 0x22c   :  { %v671_v21 = vrot.slane %v584_v16, %v1360_v11  ;;  %v676_v43 = vrot.slane %v587_v13, %v1363_v12  ;;  %v989_v11 = vsel %vm426_vm2, %v988_v42, %v984_v59 }
 0x22e   :  { %v672_v15 = vsel %vm419_vm1, %v671_v21, %v667_v19 }
 0x22f   :  { %v590_v31 = vpop.xlane.xlu0 %589  ;;  %v677_v48 = vsel %vm426_vm2, %v676_v43, %v672_v15  ;;  %v972_v50 = vpop.permute.xlu1 %971 }
 0x230   :  { %v681_v38 = vrot.slane %v590_v31, %v1366_v14  ;;  %v1045_v58 = vrot.slane %v972_v50, %v1363_v12 }
 0x232   :  { %v682_v37 = vsel %vm433_vm3, %v681_v38, %v677_v48 }
 0x233   :  { %v685_v52 = vsel %vm495_vm6, %v682_v37, %v684_v49 }
 0x234   :  { %v687_v55 = vadd.f32 %v1164_v54, %v685_v52 }
 0x236   :  { %689 = vst.msk [vmem:[#allocation10] sm:$0xf] %vm688_vm7, %v687_v55 }
 0x237   :  { %v975_v20 = vpop.permute.xlu0 %974 }
 0x238   :  { %1257 = shalt.err (!%p1254_p10)
}
 0x239   :  { %1066 = dma.vmem_to_hbm [thread:$0]  %s1064_s17, 64, %s1591_s5, [#allocation4]   ;;  %v994_v6 = vsel %vm433_vm3, %v993_v53, %v989_v11  ;;  %v1041_v12 = vsel %vm419_vm1, %v1040_v40, %v1036_v33  ;;  %v1050_v30 = vrot.slane %v975_v20, %v1366_v14 }
 0x23a   :  { %v1046_v45 = vsel %vm426_vm2, %v1045_v58, %v1041_v12  ;;  %v1052_v60 = vsel %vm492_vm4, %v1013_v36, %v994_v6  ;;  %s1266_s5 = scalar_lea.vmem %s1074_s19, 64  ;;  %p1271_p12 = scmp.lt.s32.totalorder %s1074_s19, %s1074_s19 }
 0x23b   :  { %v1051_v61 = vsel %vm433_vm3, %v1050_v30, %v1046_v45  ;;  %v1053_v63 = vsel %vm493_vm5, %v1032_v46, %v1052_v60  ;;  %p1267_p11 = scmp.ne.s32.totalorder %s1074_s19, %s1266_s5  ;;  %p1272_p13 = scmp.lt.s32.totalorder %s1266_s5, %s1266_s5 }
 0x23c   :  { %v1054_v0 = vsel %vm495_vm6, %v1051_v61, %v1053_v63 }
 0x23d   :  { %1056 = vst.msk [vmem:[#allocation11] sm:$0xf] %vm688_vm7, %v1054_v0  ;;  %p1273_p0 = por %p1272_p13, %p1271_p12 }
 0x23f   :  { %p1274_p1 = pnand %p1273_p0, %p1267_p11 }
 0x241   :  { %1277 = shalt.err (!%p1274_p1)
}
 0x242   :  { %1076 = dma.vmem_to_hbm [thread:$0]  %s1074_s19, 64, %s1592_s6, [#allocation12]  }
 0x243   :  { %1292 = dma.done.wait [#allocation4], 64  }
 0x244   :  { %1293 = vsyncadd [#allocation4], 4294967232 }
 0x245   :  { %1294 = dma.done.wait [#allocation12], 64  }
 0x246   :  { %1295 = vsyncadd [#allocation12], 4294967232 }
 0x247   :  { %1083 = vsyncpa [#allocation3], 1 }
 0x248   :  { %1084 = vsyncpa [#allocation6], 1 }
 0x249   :  { %1085 = vsyncpa [#allocation9], 1 }
 0x24a   :  { %1086 = vsyncpa [#allocation4], 1 }
 0x24b   :  { %1087 = vsyncpa [#allocation12], 1 }

</bundles_post_ra>
